<compile_context>
chip_gen: v6e
topology: v6e:2x2x1
jax: 0.10.0
libtpu: 0.0.40
codegen_flags: <defaults>
</compile_context>

<pallas_src>
import functools
import math

import jax
import jax.numpy as jnp
from jax.experimental import pallas as pl
from jax.experimental.pallas import tpu as pltpu


_MIB = 1024 * 1024


def _tpu_budget():
    """Return (block_bytes, vmem_limit_or_None, vmem_cap, lowp_ok) for this TPU."""
    kind = ""
    try:
        kind = (getattr(jax.devices()[0], "device_kind", "") or "").lower()
    except Exception:
        pass

    vmem_phys = None
    try:
        vmem_phys = int(pltpu.get_tpu_info().vmem_capacity_bytes)
    except Exception:
        vmem_phys = None
    if vmem_phys is None:
        if any(t in kind for t in ("v4", "v5", "v6")):
            vmem_phys = 128 * _MIB
        elif ("v7" in kind) or ("7x" in kind):
            vmem_phys = 64 * _MIB

    # Native bf16/f16 compute only where the VPU/EUP handle bf16 (v6e / v7x).
    lowp_ok = any(t in kind for t in ("v6", "v7", "7x"))

    if vmem_phys is None:
        # Unknown part: stay inside the most conservative scoped default (16 MiB).
        return 2 * _MIB, None, 16 * _MIB, lowp_ok
    if vmem_phys >= 96 * _MIB:        # v4 / v5e / v5p / v6e: 128 MiB physical VMEM
        return 4 * _MIB, 64 * _MIB, vmem_phys - 16 * _MIB, lowp_ok
    if vmem_phys >= 48 * _MIB:        # v7x: 64 MiB physical per TensorCore
        return 4 * _MIB, 48 * _MIB, 48 * _MIB, lowp_ok
    return 2 * _MIB, None, max(vmem_phys // 2, 8 * _MIB), lowp_ok


def _compiler_params(dim_sem, vmem_limit):
    if vmem_limit is None:
        return pltpu.CompilerParams(dimension_semantics=dim_sem)
    return pltpu.CompilerParams(dimension_semantics=dim_sem,
                                vmem_limit_bytes=int(vmem_limit))


def _sigmoid(g):
    # sigmoid(g) == 0.5 * tanh(0.5 * g) + 0.5.  tanh lowers to the EUP slot
    # (idle in this HBM-bound kernel); one EUP op, no exact-reciprocal Newton
    # sequence on the VALU and no extra precision loss.
    return jnp.tanh(g * 0.5) * 0.5 + 0.5


def _glu_split_kernel(a_ref, g_ref, o_ref, *, compute_dtype):
    """out = a * sigmoid(g); the halves arrive as separate aligned blocks."""
    a = a_ref[...].astype(compute_dtype)
    g = g_ref[...].astype(compute_dtype)
    o_ref[...] = (a * _sigmoid(g)).astype(o_ref.dtype)


def _glu_fused_kernel(x_ref, o_ref, *, compute_dtype):
    """Fallback: one block holds both halves; slice inside the kernel."""
    f = o_ref.shape[-1]
    a = x_ref[:, :f].astype(compute_dtype)
    g = x_ref[:, f:].astype(compute_dtype)
    o_ref[...] = (a * _sigmoid(g)).astype(o_ref.dtype)


def _largest_lane_tile(f: int, cap_elems: int) -> int:
    """Largest t with t % 128 == 0, f % t == 0, t <= cap (requires f % 128 == 0)."""
    m = f // 128
    d_cap = max(1, cap_elems // 128)
    best = 1
    i = 1
    while i * i <= m:
        if m % i == 0:
            for d in (i, m // i):
                if best < d <= d_cap:
                    best = d
        i += 1
    return 128 * best


def _round_down(v: int, m: int) -> int:
    return max(m, (v // m) * m)


def glu(x: jax.Array, dim: int) -> jax.Array:
    """Pallas TPU implementation of torch GLU(dim) forward."""
    dim = dim % x.ndim
    n = x.shape[dim]
    if n % 2 != 0:
        raise ValueError("GLU split dimension must be even")
    h = n // 2

    pre = x.shape[:dim]
    post = x.shape[dim + 1:]
    p = math.prod(pre) if pre else 1
    q = math.prod(post) if post else 1
    f = h * q                                   # flattened half-width (lanes)

    itemsize = jnp.dtype(x.dtype).itemsize
    pack = max(8, 32 // itemsize)               # sublane pack: 8 f32 / 16 bf16 / 32 int8

    block_bytes, vmem_limit, vmem_cap, lowp_ok = _tpu_budget()
    if lowp_ok and (x.dtype == jnp.bfloat16 or x.dtype == jnp.float16):
        compute_dtype = x.dtype                 # native low-precision on v6e/v7x
    else:
        compute_dtype = jnp.float32

    x2 = x.reshape(p, 2 * f)                    # free reshape (row-major)
    budget_elems = max(pack * 128, block_bytes // itemsize)
    cost = pl.CostEstimate(flops=4 * p * f,
                           transcendentals=p * f,
                           bytes_accessed=3 * p * f * itemsize)

    if f % 128 == 0:
        # Fast path: each half fetched as its own aligned, lane-dense block.
        tile_f = _largest_lane_tile(f, max(128, budget_elems // pack))
        tile_r = min(_round_down(budget_elems // tile_f, pack), p)
        nfb = f // tile_f                       # feature blocks per half

        # Guarantee enough grid steps for megacore sharding / pipelining on
        # non-trivial inputs (v7x has 2 TCs; grid=(1,1) leaves one idle).
        if p * f * itemsize >= 2 * _MIB:
            while pl.cdiv(p, tile_r) * nfb < 8 and tile_r >= 2 * pack:
                tile_r = _round_down(tile_r // 2, pack)

        grid = (pl.cdiv(p, tile_r), nfb)
        kernel = functools.partial(_glu_split_kernel, compute_dtype=compute_dtype)
        out2 = pl.pallas_call(
            kernel,
            out_shape=jax.ShapeDtypeStruct((p, f), x.dtype),
            grid=grid,
            in_specs=[
                pl.BlockSpec((tile_r, tile_f), lambda i, j: (i, j)),        # outputs
                pl.BlockSpec((tile_r, tile_f), lambda i, j: (i, j + nfb)),  # gate
            ],
            out_specs=pl.BlockSpec((tile_r, tile_f), lambda i, j: (i, j)),
            compiler_params=_compiler_params(("parallel", "parallel"), vmem_limit),
            cost_estimate=cost,
        )(x2, x2)
    else:
        # Fallback for non-128-aligned half widths: full feature width per block
        # (still no HBM copies); tile only over rows with a bounded block.
        rows = max(pack, _round_down(budget_elems // (2 * f), pack))
        tile_r = min(rows, p)

        # Ensure 2x-buffered (in + out) blocks fit the scoped VMEM limit; shrink
        # rows first, then bump the limit (capped) for very wide unaligned rows.
        def _need(r):
            return 2 * (r * 2 * f + r * f) * itemsize + _MIB
        limit = vmem_limit
        assumed = limit if limit is not None else 16 * _MIB
        while tile_r > pack and _need(tile_r) > assumed:
            tile_r = _round_down(tile_r // 2, pack)
        if _need(tile_r) > assumed:
            limit = min(_need(tile_r), vmem_cap)

        grid = (pl.cdiv(p, tile_r),)
        kernel = functools.partial(_glu_fused_kernel, compute_dtype=compute_dtype)
        out2 = pl.pallas_call(
            kernel,
            out_shape=jax.ShapeDtypeStruct((p, f), x.dtype),
            grid=grid,
            in_specs=[pl.BlockSpec((tile_r, 2 * f), lambda i: (i, 0))],
            out_specs=pl.BlockSpec((tile_r, f), lambda i: (i, 0)),
            compiler_params=_compiler_params(("parallel",), limit),
            cost_estimate=cost,
        )(x2)

    return out2.reshape(*pre, h, *post)


if __name__ == "__main__":
    key = jax.random.PRNGKey(0)
    k0, k1, k2 = jax.random.split(key, 3)

    # NCHW-style input, GLU over the channel dim (dim=1) -> fast path (F = 512).
    x = jax.random.normal(k0, (2, 4, 16, 16), dtype=jnp.float32)
    y = jax.block_until_ready(glu(x, dim=1))
    a, g = jnp.split(x, 2, axis=1)
    ref = a * jax.nn.sigmoid(g)
    assert y.shape == ref.shape == (2, 2, 16, 16)
    assert jnp.allclose(y, ref, atol=1e-5, rtol=1e-4), "mismatch vs reference (f32, dim=1)"

    # Last-dim GLU with a non-128-aligned half width -> fused fallback path.
    x2 = jax.random.normal(k1, (4, 8, 64), dtype=jnp.float32)
    y2 = jax.block_until_ready(glu(x2, dim=-1))
    a2, g2 = jnp.split(x2, 2, axis=-1)
    ref2 = a2 * jax.nn.sigmoid(g2)
    assert jnp.allclose(y2, ref2, atol=1e-5, rtol=1e-4), "mismatch vs reference (f32, dim=-1)"

    # bf16 input: exercises 16-row sublane packing and (on v6e/v7x) native bf16 compute.
    x3 = jax.random.normal(k2, (16, 8, 256), dtype=jnp.bfloat16)
    y3 = jax.block_until_ready(glu(x3, dim=1))
    a3, g3 = jnp.split(x3.astype(jnp.float32), 2, axis=1)
    ref3 = a3 * jax.nn.sigmoid(g3)
    assert jnp.allclose(y3.astype(jnp.float32), ref3, atol=5e-2, rtol=5e-2), "mismatch (bf16)"

    print("KERNEL_OK")
</pallas_src>

<mosaic_0001>
module attributes {stable_mosaic.version = 11 : i64} {
  func.func @_glu_split_kernel(%arg0: i32, %arg1: i32, %arg2: memref<2x512xf32, #tpu.memory_space<vmem>>, %arg3: memref<2x512xf32, #tpu.memory_space<vmem>>, %arg4: memref<2x512xf32, #tpu.memory_space<vmem>>) attributes {dimension_semantics = [#tpu.dimension_semantics<parallel>, #tpu.dimension_semantics<parallel>], iteration_bounds = array<i64: 1, 1>, scalar_prefetch = 0 : i64, scratch_operands = 0 : i64, tpu.core_type = #tpu.core_type<tc>, window_params = [{transform_indices = @transform_0, window_bounds = array<i64: 2, 512>}, {transform_indices = @transform_1, window_bounds = array<i64: 2, 512>}, {transform_indices = @transform_2, window_bounds = array<i64: 2, 512>}]} {
    %c0 = arith.constant 0 : index
    %c0_0 = arith.constant 0 : index
    %0 = vector.load %arg2[%c0, %c0_0] : memref<2x512xf32, #tpu.memory_space<vmem>>, vector<2x512xf32>
    %c0_1 = arith.constant 0 : index
    %c0_2 = arith.constant 0 : index
    %1 = vector.load %arg3[%c0_1, %c0_2] : memref<2x512xf32, #tpu.memory_space<vmem>>, vector<2x512xf32>
    %cst = arith.constant 5.000000e-01 : f32
    %2 = vector.broadcast %cst : f32 to vector<2x512xf32>
    %3 = arith.mulf %1, %2 : vector<2x512xf32>
    %4 = math.tanh %3 : vector<2x512xf32>
    %cst_3 = arith.constant 5.000000e-01 : f32
    %5 = vector.broadcast %cst_3 : f32 to vector<2x512xf32>
    %6 = arith.mulf %4, %5 : vector<2x512xf32>
    %cst_4 = arith.constant 5.000000e-01 : f32
    %7 = vector.broadcast %cst_4 : f32 to vector<2x512xf32>
    %8 = arith.addf %6, %7 : vector<2x512xf32>
    %9 = arith.mulf %0, %8 : vector<2x512xf32>
    %c0_5 = arith.constant 0 : index
    %c0_6 = arith.constant 0 : index
    %10 = vector.load %arg4[%c0_5, %c0_6] : memref<2x512xf32, #tpu.memory_space<vmem>>, vector<2x512xf32>
    tpu.vector_store %arg4[%c0_5, %c0_6], %9 {strides = array<i32>} : memref<2x512xf32, #tpu.memory_space<vmem>>, vector<2x512xf32>,
    return
  }
  func.func @transform_0(%arg0: i32, %arg1: i32) -> (i32, i32) {
    %c0_i32 = arith.constant 0 : i32
    return %arg0, %arg1 : i32, i32
  }
  func.func @transform_1(%arg0: i32, %arg1: i32) -> (i32, i32) {
    %c1_i32 = arith.constant 1 : i32
    %0 = arith.addi %arg1, %c1_i32 : i32
    %c0_i32 = arith.constant 0 : i32
    return %arg0, %0 : i32, i32
  }
  func.func @transform_2(%arg0: i32, %arg1: i32) -> (i32, i32) {
    %c0_i32 = arith.constant 0 : i32
    return %arg0, %arg1 : i32, i32
  }
}

</mosaic_0001>

<bundles_post_ra>
// kernel: tpu_custom_call.1
= control target key start
LH: loop header
LB: loop body
LE: loop exit
PB: predicated region body
PF: predicated region fallthrough
CT: control target
= control target key end

     0   :  { %7 = vsyncpa [#allocation3], 0  ;;  %s168_s0 = inlined_call_operand.hbm [shape: f32[2,1024], index: 0, kind: input, shape index: {}]   ;;  %s169_s1 = inlined_call_operand.hbm [shape: f32[2,1024], index: 1, kind: input, shape index: {}]   ;;  %s170_s2 = inlined_call_operand.hbm [shape: f32[2,512], index: 2, kind: output, shape index: {}]  }
   0x1   :  { %8 = vsyncpa [#allocation6], 0 }
   0x2   :  { %9 = vsyncpa [#allocation4], 0  ;;  %s66_s11 = scalar_lea.hbm %s169_s1, 128  ;;  %s141_s12 = smov [#allocation2]  }
   0x3   :  { %s16_s13 = sshll.u32 %s141_s12, 4  ;;  %s142_s14 = smov [#allocation5]   ;;  %s17_s13 = int_to_ptr.vmem [resolvable:$true] %s16_s13 }
   0x4   :  { %s30_s15 = sshll.u32 %s142_s14, 4  ;;  %s80_s16 = scalar_lea.vmem %s17_s13, 128  ;;  %s31_s15 = int_to_ptr.vmem [resolvable:$true] %s30_s15 }
   0x5   :  { %p81_p0 = scmp.ne.s32.totalorder %s17_s13, %s80_s16  ;;  %p85_p1 = scmp.lt.s32.totalorder %s17_s13, %s17_s13 }
   0x6   :  { %p86_p2 = scmp.lt.s32.totalorder %s80_s16, %s80_s16 }
   0x8   :  { %p87_p3 = por %p86_p2, %p85_p1 }
   0xa   :  { %p88_p4 = pnand %p87_p3, %p81_p0 }
   0xc   :  { %91 = shalt.err (!%p88_p4)
}
   0xd   :  { %19 = dma.hbm_to_vmem [thread:$0]  %s168_s0, 128, %s17_s13, [#allocation3]  }
   0xe   :  { %s102_s19 = scalar_lea.vmem %s31_s15, 128  ;;  %p107_p6 = scmp.lt.s32.totalorder %s31_s15, %s31_s15 }
   0xf   :  { %p103_p5 = scmp.ne.s32.totalorder %s31_s15, %s102_s19  ;;  %p108_p7 = scmp.lt.s32.totalorder %s102_s19, %s102_s19 }
  0x11   :  { %p109_p8 = por %p108_p7, %p107_p6 }
  0x13   :  { %p110_p9 = pnand %p109_p8, %p103_p5 }
  0x15   :  { %113 = shalt.err (!%p110_p9)
}
  0x16   :  { %33 = dma.hbm_to_vmem [thread:$0]  %s66_s11, 128, %s31_s15, [#allocation6]  }
  0x17   :  { %135 = dma.done.wait [#allocation3], 128  }
  0x18   :  { %136 = vsyncadd [#allocation3], 4294967168 }
  0x19   :  { %137 = dma.done.wait [#allocation6], 128  }
  0x1a   :  { %138 = vsyncadd [#allocation6], 4294967168  ;;  %v43_v0 = vld [vmem:[#allocation5] sm:$0xff]  ;;  %v42_v4 = vld [vmem:[#allocation2] sm:$0xff]  ;;  %s143_s0 = smov [#allocation7]  }
  0x1b   :  { %v44_v1 = vmul.f32 0.5, %v43_v0  ;;  %s56_s1 = sshll.u32 %s143_s0, 4  ;;  %s57_s1 = int_to_ptr.vmem [resolvable:$true] %s56_s1 }
  0x1c   :  { %s115_s20 = scalar_lea.vmem %s57_s1, 128  ;;  %p120_p11 = scmp.lt.s32.totalorder %s57_s1, %s57_s1 }
  0x1d   :  { %70 = vtanh.f32 %v44_v1  ;;  %p116_p10 = scmp.ne.s32.totalorder %s57_s1, %s115_s20  ;;  %p121_p12 = scmp.lt.s32.totalorder %s115_s20, %s115_s20 }
  0x1f   :  { %p122_p13 = por %p121_p12, %p120_p11 }
  0x21   :  { %p123_p0 = pnand %p122_p13, %p116_p10 }
  0x2a   :  { %v71_v2 = vpop.eup %70 }
  0x2b   :  { %v46_v3 = vmul.f32 0.5, %v71_v2 }
  0x2d   :  { %v47_v5 = vadd.f32 0.5, %v46_v3 }
  0x2f   :  { %v48_v6 = vmul.f32 %v47_v5, %v42_v4 }
  0x31   :  { %49 = vst [vmem:[#allocation7] sm:$0xff] %v48_v6 }
  0x32   :  { %126 = shalt.err (!%p123_p0)
}
  0x33   :  { %59 = dma.vmem_to_hbm [thread:$0]  %s57_s1, 128, %s170_s2, [#allocation4]  }
  0x34   :  { %139 = dma.done.wait [#allocation4], 128  }
  0x35   :  { %140 = vsyncadd [#allocation4], 4294967168 }
  0x36   :  { %63 = vsyncpa [#allocation3], 1 }
  0x37   :  { %64 = vsyncpa [#allocation6], 1 }
  0x38   :  { %65 = vsyncpa [#allocation4], 1 }

</bundles_post_ra>
